<compile_context>
chip_gen: v7x
topology: tpu7x:2x2x1
jax: 0.10.0
libtpu: 0.0.40
codegen_flags: <defaults>
</compile_context>

<pallas_src>
import jax
import jax.numpy as jnp
from jax.experimental import pallas as pl
from jax.experimental.pallas import tpu as pltpu

_CHUNK = 512  # in-kernel compute chunk (rows); bounds f32 temporaries


def _round_up(x, m):
    return ((x + m - 1) // m) * m


# ----------------------------------------------------------------------------
# Kernel factory: one (tile_n, D) row tile of s / s_n -> one (2, tile_n) tile.
# ----------------------------------------------------------------------------
def _make_kernel(tile_n, d_feat):
    if tile_n > _CHUNK and tile_n % _CHUNK == 0:
        chunk, n_chunks = _CHUNK, tile_n // _CHUNK
    else:
        chunk, n_chunks = tile_n, 1

    def kernel(s_ref, sn_ref, out_ref):
        # Hoisted constant: (1, D) ones, reduces over D via the otherwise-idle MXU.
        ones = jnp.ones((1, d_feat), jnp.float32)

        # Static-offset chunk loop: static slices only (no dynamic lane indexing),
        # keeps the f32 working set per chunk small regardless of the DMA tile.
        for c in range(n_chunks):
            r0 = c * chunk
            s = s_ref[r0:r0 + chunk, :].astype(jnp.float32)
            sn = sn_ref[r0:r0 + chunk, :].astype(jnp.float32)
            diff = s - sn                      # (chunk, D)  VPU
            sq = diff * diff                   # (chunk, D)  VPU

            # (1, D) . (chunk, D)^T -> (1, chunk): per-row sum of squares lands
            # directly on the lane axis -- no sublane->lane relayout before store.
            ssum = jax.lax.dot_general(
                ones, sq,
                dimension_numbers=(((1,), (1,)), ((), ())),
                preferred_element_type=jnp.float32,
                precision=jax.lax.Precision.HIGHEST,   # MXU is free; keep f32 bits
            )                                  # (1, chunk)

            logits = 5.0 - jnp.sqrt(ssum)      # (1, chunk)  EUP
            score = jax.nn.sigmoid(logits)     # (1, chunk)  EUP

            # Single fused lane-dense store: row 0 = logits, row 1 = score.
            out_ref[:, r0:r0 + chunk] = jnp.concatenate([logits, score], axis=0)

    return kernel


# ----------------------------------------------------------------------------
# Tile selection
# ----------------------------------------------------------------------------
def _choose_tile_n(n, d_feat, itemsize):
    """Row tile for the streaming grid.

    VMEM accounting uses the lane-padded feature width (VMEM pads the last dim
    to 128): 2 inputs x 2 pipeline buffers x tile_n x round_up(D,128) x itemsize
    against a 16 MiB budget (comfortable on v5e/v6e 128 MiB and v7x 64 MiB).
    Compute temporaries are bounded separately by the in-kernel _CHUNK loop.
    """
    d_pad = _round_up(d_feat, 128)
    per_row_vmem = 2 * 2 * d_pad * itemsize
    vmem_budget = 16 * 1024 * 1024
    t = (vmem_budget // per_row_vmem) // _CHUNK * _CHUNK
    t = max(_CHUNK, min(8192, t))

    # Keep >= ~1 MiB of input HBM traffic per grid step so the ~0.35 us/step
    # pipeline overhead stays negligible (measured ~85% of roofline there).
    per_row_hbm = max(1, 2 * d_feat * itemsize)
    t_dma_floor = min(t, _round_up(pl.cdiv(1 << 20, per_row_hbm), _CHUNK))

    if n > _CHUNK:
        # Aim for >= 8 row tiles so the "parallel" grid axis load-balances across
        # v7x's two TensorCores, but never shrink below the DMA-bytes floor.
        t_balance = _round_up(pl.cdiv(n, 8), _CHUNK)
        t = min(t, max(t_dma_floor, t_balance))
    return int(t)


# ----------------------------------------------------------------------------
# Wrapper
# ----------------------------------------------------------------------------
def contrastive_forward(s, a, s_n, *, tile_n=None):
    """Pallas equivalent of Contrastive.forward.

    `a` is accepted but unused, exactly as in the reference module.
    Returns (score_logits, score), each shape [N] float32.
    """
    del a
    assert s.shape == s_n.shape and s.ndim == 2
    n, d_feat = s.shape
    itemsize = jnp.dtype(s.dtype).itemsize

    if tile_n is None:
        tile_n = _choose_tile_n(n, d_feat, itemsize)

    if n <= tile_n:
        # Single tile: block shape == full array shape -> always layout-legal,
        # no padding of any kind.
        tile_n = n
        grid_n = 1
    else:
        assert tile_n % 128 == 0, "row tile must be a multiple of 128"
        grid_n = pl.cdiv(n, tile_n)
    n_pad = grid_n * tile_n

    # NOTE: inputs are intentionally NOT padded (no extra HBM read+write pass).
    # When n % tile_n != 0 the last input block overruns the array; those
    # garbage rows only influence output columns >= n, which are sliced off
    # below (the ones-matmul contracts over D only, so there is no
    # cross-row/column mixing).
    fused = pl.pallas_call(
        _make_kernel(tile_n, d_feat),
        out_shape=jax.ShapeDtypeStruct((2, n_pad), jnp.float32),
        grid=(grid_n,),
        in_specs=[
            pl.BlockSpec((tile_n, d_feat), lambda i: (i, 0)),
            pl.BlockSpec((tile_n, d_feat), lambda i: (i, 0)),
        ],
        out_specs=pl.BlockSpec((2, tile_n), lambda i: (0, i)),
        compiler_params=pltpu.CompilerParams(
            dimension_semantics=("parallel",),   # v7x: shard row tiles over 2 TCs
            vmem_limit_bytes=48 * 1024 * 1024,   # <= v7x's 64 MiB physical VMEM
        ),
    )(s, s_n)

    return fused[0, :n], fused[1, :n]


# ----------------------------------------------------------------------------
# Self-test
# ----------------------------------------------------------------------------
if __name__ == "__main__":
    def _ref(s, s_n):
        lg = 5.0 - jnp.sqrt(jnp.sum((s - s_n) ** 2, axis=1))
        return lg, jax.nn.sigmoid(lg)

    # --- small shapes consistent with the module (rows = samples) ---
    k_s, k_a, k_sn = jax.random.split(jax.random.PRNGKey(0), 3)
    N, D = 8, 32
    s = jax.random.normal(k_s, (N, D), jnp.float32)
    a = jax.random.normal(k_a, (N, D), jnp.float32)   # ignored, as in PyTorch
    s_n = jax.random.normal(k_sn, (N, D), jnp.float32)

    logits, score = contrastive_forward(s, a, s_n)
    jax.block_until_ready((logits, score))
    ref_logits, ref_score = _ref(s, s_n)
    assert logits.shape == (N,) and score.shape == (N,)
    assert jnp.allclose(logits, ref_logits, atol=1e-4, rtol=1e-4)
    assert jnp.allclose(score, ref_score, atol=1e-4, rtol=1e-4)

    # --- multi-tile path with a partial (un-padded) last block ---
    N2, D2 = 300, 48
    k2s, k2n = jax.random.split(jax.random.PRNGKey(1), 2)
    s2 = jax.random.normal(k2s, (N2, D2), jnp.float32)
    s2n = jax.random.normal(k2n, (N2, D2), jnp.float32)
    lg2, sc2 = contrastive_forward(s2, None, s2n, tile_n=128)   # 3 tiles, last partial
    jax.block_until_ready((lg2, sc2))
    ref_lg2, ref_sc2 = _ref(s2, s2n)
    assert lg2.shape == (N2,) and sc2.shape == (N2,)
    assert jnp.allclose(lg2, ref_lg2, atol=1e-4, rtol=1e-4)
    assert jnp.allclose(sc2, ref_sc2, atol=1e-4, rtol=1e-4)

    # --- chunked-compute path (tile > _CHUNK) + partial last block ---
    N3, D3 = 2000, 32
    k3s, k3n = jax.random.split(jax.random.PRNGKey(2), 2)
    s3 = jax.random.normal(k3s, (N3, D3), jnp.float32)
    s3n = jax.random.normal(k3n, (N3, D3), jnp.float32)
    lg3, sc3 = contrastive_forward(s3, None, s3n, tile_n=1024)  # 2 tiles x 2 chunks
    jax.block_until_ready((lg3, sc3))
    ref_lg3, ref_sc3 = _ref(s3, s3n)
    assert jnp.allclose(lg3, ref_lg3, atol=1e-4, rtol=1e-4)
    assert jnp.allclose(sc3, ref_sc3, atol=1e-4, rtol=1e-4)

    print("KERNEL_OK")
</pallas_src>

<mosaic_0001>
module attributes {stable_mosaic.version = 11 : i64} {
  func.func @kernel(%arg0: i32, %arg1: memref<8x32xf32, #tpu.memory_space<vmem>>, %arg2: memref<8x32xf32, #tpu.memory_space<vmem>>, %arg3: memref<2x8xf32, #tpu.memory_space<vmem>>) attributes {dimension_semantics = [#tpu.dimension_semantics<parallel>], iteration_bounds = array<i64: 1>, scalar_prefetch = 0 : i64, scratch_operands = 0 : i64, tpu.core_type = #tpu.core_type<tc>, window_params = [{transform_indices = @transform_0, window_bounds = array<i64: 8, 32>}, {transform_indices = @transform_1, window_bounds = array<i64: 8, 32>}, {transform_indices = @transform_2, window_bounds = array<i64: 2, 8>}]} {
    %cst = arith.constant 1.000000e+00 : f32
    %0 = vector.broadcast %cst : f32 to vector<1x32xf32>
    %c0 = arith.constant 0 : index
    %c0_0 = arith.constant 0 : index
    %1 = vector.load %arg1[%c0, %c0_0] : memref<8x32xf32, #tpu.memory_space<vmem>>, vector<8x32xf32>
    %c0_1 = arith.constant 0 : index
    %c0_2 = arith.constant 0 : index
    %2 = vector.load %arg2[%c0_1, %c0_2] : memref<8x32xf32, #tpu.memory_space<vmem>>, vector<8x32xf32>
    %3 = arith.subf %1, %2 : vector<8x32xf32>
    %4 = arith.mulf %3, %3 : vector<8x32xf32>
    %cst_3 = arith.constant dense<0.000000e+00> : vector<1x8xf32>
    %5 = tpu.matmul %0, %4, %cst_3 {dimension_numbers = #tpu.dot_dimension_numbers<[1], [1], [0], [0], [0, 0, 1, 0], [], []>, precision = #tpu.contract_precision<fp32>} : vector<1x32xf32>, vector<8x32xf32>, vector<1x8xf32> -> vector<1x8xf32>
    %6 = math.sqrt %5 : vector<1x8xf32>
    %cst_4 = arith.constant 5.000000e+00 : f32
    %7 = vector.broadcast %cst_4 : f32 to vector<1x8xf32>
    %8 = arith.subf %7, %6 : vector<1x8xf32>
    %9 = arith.negf %8 : vector<1x8xf32>
    %10 = math.exp %9 : vector<1x8xf32>
    %cst_5 = arith.constant 1.000000e+00 : f32
    %11 = vector.broadcast %cst_5 : f32 to vector<1x8xf32>
    %12 = arith.addf %11, %10 : vector<1x8xf32>
    %13 = arith.divf %11, %12 : vector<1x8xf32>
    %14 = tpu.concatenate %8, %13 in 0 : vector<1x8xf32>, vector<1x8xf32> -> vector<2x8xf32>
    %c0_6 = arith.constant 0 : index
    %c0_7 = arith.constant 0 : index
    %15 = vector.load %arg3[%c0_6, %c0_7] : memref<2x8xf32, #tpu.memory_space<vmem>>, vector<2x8xf32>
    tpu.vector_store %arg3[%c0_6, %c0_7], %14 {strides = array<i32>} : memref<2x8xf32, #tpu.memory_space<vmem>>, vector<2x8xf32>,
    return
  }
  func.func @transform_0(%arg0: i32) -> (i32, i32) {
    %c0_i32 = arith.constant 0 : i32
    %c0_i32_0 = arith.constant 0 : i32
    return %arg0, %c0_i32 : i32, i32
  }
  func.func @transform_1(%arg0: i32) -> (i32, i32) {
    %c0_i32 = arith.constant 0 : i32
    %c0_i32_0 = arith.constant 0 : i32
    return %arg0, %c0_i32 : i32, i32
  }
  func.func @transform_2(%arg0: i32) -> (i32, i32) {
    %c0_i32 = arith.constant 0 : i32
    %c0_i32_0 = arith.constant 0 : i32
    return %c0_i32, %arg0 : i32, i32
  }
}

</mosaic_0001>

<bundles_post_ra>
// kernel: tpu_custom_call.1
= control target key start
LH: loop header
LB: loop body
LE: loop exit
PB: predicated region body
PF: predicated region fallthrough
CT: control target
= control target key end

     0   :  { %7 = vsyncpa [#allocation3], 0  ;;  %s739_s0 = inlined_call_operand.hbm [shape: f32[8,32], index: 0, kind: input, shape index: {}]   ;;  %s740_s1 = inlined_call_operand.hbm [shape: f32[8,32], index: 1, kind: input, shape index: {}]   ;;  %s741_s2 = inlined_call_operand.hbm [shape: f32[2,8], index: 2, kind: output, shape index: {}]  }
   0x1   :  { %8 = vsyncpa [#allocation6], 0 }
   0x2   :  { %9 = vsyncpa [#allocation4], 0  ;;  %s670_s9 = smov [#allocation2]   ;;  %s671_s11 = smov [#allocation5]  }
   0x3   :  { %s16_s10 = sshll.u32 %s670_s9, 4  ;;  %s26_s12 = sshll.u32 %s671_s11, 4  ;;  %s17_s10 = int_to_ptr.vmem [resolvable:$true] %s16_s10  ;;  %s27_s12 = int_to_ptr.vmem [resolvable:$true] %s26_s12 }
   0x4   :  { %s598_s15 = scalar_lea.hbm %s739_s0, 128 }
   0x5   :  { %p599_p0 = scmp.ne.s32.totalorder %s739_s0, %s598_s15  ;;  %p602_p1 = scmp.lt.u32.totalorder %s598_s15, %s739_s0 }
   0x7   :  { %p604_p2 = pnand %p602_p1, %p599_p0 }
   0x9   :  { %607 = shalt.err (!%p604_p2)
}
   0xa   :  { %s608_s20 = scalar_lea.vmem %s17_s10, 128  ;;  %p613_p4 = scmp.lt.s32.totalorder %s17_s10, %s17_s10 }
   0xb   :  { %p609_p3 = scmp.ne.s32.totalorder %s17_s10, %s608_s20  ;;  %p614_p5 = scmp.lt.s32.totalorder %s608_s20, %s608_s20 }
   0xd   :  { %p615_p6 = por %p614_p5, %p613_p4 }
   0xf   :  { %p616_p7 = pnand %p615_p6, %p609_p3 }
  0x11   :  { %619 = shalt.err (!%p616_p7)
}
  0x12   :  { %19 = dma.hbm_to_vmem [thread:$0]  %s739_s0, 128, %s17_s10, [#allocation3]  }
  0x13   :  { %s620_s25 = scalar_lea.hbm %s740_s1, 128 }
  0x14   :  { %p621_p8 = scmp.ne.s32.totalorder %s740_s1, %s620_s25  ;;  %p624_p9 = scmp.lt.u32.totalorder %s620_s25, %s740_s1 }
  0x16   :  { %p626_p10 = pnand %p624_p9, %p621_p8 }
  0x18   :  { %629 = shalt.err (!%p626_p10)
}
  0x19   :  { %s630_s30 = scalar_lea.vmem %s27_s12, 128  ;;  %p635_p12 = scmp.lt.s32.totalorder %s27_s12, %s27_s12 }
  0x1a   :  { %p631_p11 = scmp.ne.s32.totalorder %s27_s12, %s630_s30  ;;  %p636_p13 = scmp.lt.s32.totalorder %s630_s30, %s630_s30 }
  0x1c   :  { %p637_p0 = por %p636_p13, %p635_p12 }
  0x1e   :  { %p638_p1 = pnand %p637_p0, %p631_p11 }
  0x20   :  { %641 = shalt.err (!%p638_p1)
}
  0x21   :  { %29 = dma.hbm_to_vmem [thread:$0]  %s740_s1, 128, %s27_s12, [#allocation6]  }
  0x22   :  { %664 = dma.done.wait [#allocation3], 128  }
  0x23   :  { %665 = vsyncadd [#allocation3], 4294967168 }
  0x24   :  { %666 = dma.done.wait [#allocation6], 128  }
  0x25   :  { %667 = vsyncadd [#allocation6], 4294967168  ;;  %vm40_vm0 = vcmask 261120   ;;  %v672_v0 = vmov 0.0   ;;  %v673_v1 = vmov 0   ;;  %vm674_vm1 = vmmov 0  }
  0x26   :  { %546 = vmatprep.subr.mxu1 %v672_v0  ;;  %561 = vmatprep.subr.mxu0 %v672_v0  ;;  %v42_v2 = vsel %vm40_vm0, 1.0, %v673_v1  ;;  %v36_v5 = vld [vmem:[#allocation2] sm:$0xff]  ;;  %v37_v6 = vld [vmem:[#allocation5] sm:$0xff]  ;;  %v675_v17 = vmov 1.0   ;;  %s676_s1 = smov [#allocation7]   ;;  %vm510_vm4 = vcmask 1040384  }
  0x27   :  { %548 = vmatprep.mubr.msk.f32.mxu1 %vm674_vm1, %v672_v0  ;;  %563 = vmatprep.mubr.msk.f32.mxu0 %vm674_vm1, %v672_v0  ;;  %v114_v3 = vsub.f32 %v42_v2, %v42_v2  ;;  %v38_v7 = vsub.f32 %v36_v5, %v37_v6  ;;  %s520_s4 = sshll.u32 %s676_s1, 4  ;;  %vm512_vm5 = vcmask 58368   ;;  %s521_s4 = int_to_ptr.vmem [resolvable:$true] %s520_s4 }
  0x28   :  { %s642_s5 = scalar_lea.vmem %s521_s4, 32  ;;  %p647_p3 = scmp.lt.s32.totalorder %s521_s4, %s521_s4 }
  0x29   :  { %v115_v4 = vand.u32 4294901760, %v114_v3  ;;  %v39_v8 = vmul.f32 %v38_v7, %v38_v7  ;;  %p643_p2 = scmp.ne.s32.totalorder %s521_s4, %s642_s5  ;;  %p648_p4 = scmp.lt.s32.totalorder %s642_s5, %s642_s5 }
  0x2b   :  { %v116_v9 = vsub.f32 %v114_v3, %v115_v4  ;;  %v45_v10 = vsel %vm40_vm0, %v39_v8, 0  ;;  %p649_p5 = por %p648_p4, %p647_p3 }
  0x2c   :  { %v48_v11 = vand.u32 4294901760, %v45_v10 }
  0x2d   :  { %v117_v12 = vand.u32 4294901760, %v116_v9  ;;  %p650_p6 = pnand %p649_p5, %p643_p2 }
  0x2e   :  { %547 = vmatpush3.xpose.msra.mxu1 %v48_v11  ;;  %v125_v13 = vsub.f32 %v45_v10, %v48_v11  ;;  %562 = vmatpush3.xpose.msra.mxu0 %v48_v11 }
  0x2f   :  { %551 = vmatprep.subr.mxu1 %v672_v0  ;;  %566 = vmatprep.subr.mxu0 %v672_v0 }
  0x30   :  { %v126_v14 = vand.u32 4294901760, %v125_v13 }
  0x31   :  { %549 = vmatmul.mubr.f32.vlgmr.msra.gmra.mrb[0].mxu1 %v117_v12  ;;  %564 = vmatmul.mubr.f32.vlgmr.msra.gmra.mrb[0].mxu0 %v115_v4 }
  0x32   :  { %v127_v15 = vsub.f32 %v125_v13, %v126_v14  ;;  %567 = vmatpush3.xpose.msra.mxu0 %v126_v14  ;;  %553 = vmatprep.mubr.msk.f32.mxu1 %vm674_vm1, %v672_v0 }
  0x33   :  { %568 = vmatprep.mubr.msk.f32.mxu0 %vm674_vm1, %v672_v0  ;;  %571 = vmatprep.subr.mxu0 %v672_v0 }
  0x34   :  { %v128_v16 = vand.u32 4294901760, %v127_v15 }
  0x36   :  { %552 = vmatpush3.xpose.msra.mxu1 %v128_v16 }
  0x37   :  { %556 = vmatprep.subr.mxu1 %v672_v0 }
  0x39   :  { %554 = vmatmul.mubr.msk.f32.vlgmr.msra.gmra.mrb[0].mxu1 %vm40_vm0, %v675_v17  ;;  %569 = vmatmul.mubr.msk.f32.vlgmr.msra.gmra.mrb[0].mxu0 %vm40_vm0, %v675_v17 }
  0x3a   :  { %557 = vmatpush3.xpose.msra.mxu1 %v125_v13  ;;  %572 = vmatpush3.xpose.msra.mxu0 %v48_v11 }
  0x3b   :  { %558 = vmatprep.mubr.msk.f32.mxu1 %vm674_vm1, %v672_v0  ;;  %573 = vmatprep.mubr.msk.f32.mxu0 %vm674_vm1, %v672_v0 }
  0x41   :  { %559 = vmatmul.mubr.f32.vlgmr.msra.gmra.mrb[0].mxu1 %v114_v3  ;;  %574 = vmatmul.mubr.msk.f32.vlgmr.msra.gmra.mrb[0].mxu0 %vm40_vm0, %v675_v17 }
 0x114   :  { %v269_v18 = vpop.f32.mrb[0].mxu1  ;;  %v489_v19 = vpop.f32.mrb[0].mxu0 }
 0x115   :  { %v576_v20 = vadd.f32 %v489_v19, %v269_v18  ;;  %v560_v21 = vpop.f32.mrb[1].mxu1  ;;  %v575_v22 = vpop.f32.mrb[1].mxu0 }
 0x117   :  { %592 = vrsqrt.f32 %v576_v20  ;;  %vm495_vm2 = vcmp.eq.f32.partialorder %v576_v20, inf  ;;  %v498_v25 = vand.u32 2147483648, %v576_v20  ;;  %vm497_vm3 = vcmp.eq.f32.partialorder %v576_v20, 0.0 }
 0x121   :  { %v593_v23 = vpop.eup %592 }
 0x122   :  { %v494_v24 = vmul.f32 %v593_v23, %v576_v20 }
 0x124   :  { %v496_v26 = vsel %vm495_vm2, %v576_v20, %v494_v24 }
 0x125   :  { %v499_v27 = vsel %vm497_vm3, %v498_v25, %v496_v26 }
 0x126   :  { %v500_v28 = vsub.f32 5.0, %v499_v27 }
 0x128   :  { %v533_v29 = vmul.f32 -1.442695, %v500_v28 }
 0x12a   :  { %594 = vpow2.f32 %v533_v29 }
 0x134   :  { %v595_v30 = vpop.eup %594 }
 0x135   :  { %v504_v31 = vadd.f32 1.0, %v595_v30 }
 0x137   :  { %596 = vrcp.f32 %v504_v31 }
 0x141   :  { %v597_v32 = vpop.eup %596 }
 0x142   :  { %v508_v33 = vrot.slane %v597_v32, 7 }
 0x144   :  { %v511_v34 = vsel %vm510_vm4, %v500_v28, %v508_v33 }
 0x145   :  { %513 = vst.msk [vmem:[#allocation7] sm:$0x3] %vm512_vm5, %v511_v34 }
 0x146   :  { %653 = shalt.err (!%p650_p6)
}
 0x147   :  { %s654_s8 = scalar_lea.hbm %s741_s2, 32 }
 0x148   :  { %p655_p7 = scmp.ne.s32.totalorder %s741_s2, %s654_s8  ;;  %p658_p8 = scmp.lt.u32.totalorder %s654_s8, %s741_s2 }
 0x14a   :  { %p660_p9 = pnand %p658_p8, %p655_p7 }
 0x14c   :  { %663 = shalt.err (!%p660_p9)
}
 0x14d   :  { %523 = dma.vmem_to_hbm [thread:$0]  %s521_s4, 32, %s741_s2, [#allocation4]  }
 0x14e   :  { %668 = dma.done.wait [#allocation4], 32  }
 0x14f   :  { %669 = vsyncadd [#allocation4], 4294967264 }
 0x150   :  { %527 = vsyncpa [#allocation3], 1 }
 0x151   :  { %528 = vsyncpa [#allocation6], 1 }
 0x152   :  { %529 = vsyncpa [#allocation4], 1 }

</bundles_post_ra>
